<compile_context>
chip_gen: v7x
topology: tpu7x:2x2x1
jax: 0.10.0
libtpu: 0.0.40
codegen_flags: <defaults>
</compile_context>

<pallas_src>
import jax
import jax.numpy as jnp
from jax.experimental import pallas as pl
from jax.experimental.pallas import tpu as pltpu


_LANES = 128
_SUBLANES = 8
# ~2 MiB per x buffer: large enough to hide per-step overhead (>=85% of HBM
# roofline measured at this size), small enough that 2 buffers + weight +
# output fit every generation's scoped VMEM default (incl. v5e's 16 MiB).
_TARGET_X_BUF_BYTES = 2 * 1024 * 1024


def _round_up(x, m):
    return ((x + m - 1) // m) * m


def _round_down(x, m):
    return (x // m) * m


def _matvec_kernel(x_ref, w_ref, b_ref, o_ref):
    # x_ref: (tb, D) VMEM; w_ref: (1, D) VMEM (lane-dense); b_ref: (1, 1) SMEM.
    # Row dot-product on VPU (+ XLU lane reduce); the MXU buys nothing at N=1.
    y = jnp.sum(x_ref[...] * w_ref[...], axis=-1, keepdims=True) + b_ref[0, 0]
    o_ref[...] = y.astype(o_ref.dtype)


def _affine_kernel(x_ref, w_ref, b_ref, o_ref):
    # D == 1 path: lane-dense elementwise scale-and-shift, y = w*x + b.
    # x_ref: (tr, 128) VMEM; w_ref, b_ref: (1, 1) SMEM scalars.
    o_ref[...] = (x_ref[...] * w_ref[0, 0] + b_ref[0, 0]).astype(o_ref.dtype)


def _linear_forward_d1(x, weight, b_s, B):
    # View the single feature column as a flat vector and tile it (rows, 128)
    # so every vreg lane (and every output store) carries useful data.
    bp = _round_up(B, _SUBLANES * _LANES)
    x_flat = x.reshape(-1)
    if bp != B:
        # Tiny pad (< 4 KiB of traffic) purely to get an exact lane-dense view.
        x_flat = jnp.pad(x_flat, (0, bp - B))
    rows = bp // _LANES                          # multiple of 8 by construction
    x2d = x_flat.reshape(rows, _LANES)

    bytes_per_row = _LANES * 4
    tr = _TARGET_X_BUF_BYTES // bytes_per_row
    # Keep >= ~4 grid steps when possible so v7x can shard across its 2 TCs.
    tr = min(tr, rows, max(_SUBLANES, _round_up(pl.cdiv(rows, 4), _SUBLANES)))
    tr = max(_SUBLANES, _round_down(tr, _SUBLANES))

    grid = pl.cdiv(rows, tr)
    w_s = weight.reshape(1, 1)

    needed = 4 * tr * _LANES * 4 + (2 << 20)     # double-buffered in + out
    vmem_limit = int(min(max(2 * needed, 32 << 20), 64 << 20))

    out2d = pl.pallas_call(
        _affine_kernel,
        out_shape=jax.ShapeDtypeStruct((rows, _LANES), jnp.float32),
        grid_spec=pltpu.PrefetchScalarGridSpec(
            num_scalar_prefetch=0,
            grid=(grid,),
            in_specs=[
                pl.BlockSpec((tr, _LANES), lambda i: (i, 0)),            # x tile
                pl.BlockSpec(memory_space=pltpu.MemorySpace.SMEM),       # weight
                pl.BlockSpec(memory_space=pltpu.MemorySpace.SMEM),       # bias
            ],
            out_specs=pl.BlockSpec((tr, _LANES), lambda i: (i, 0)),
        ),
        compiler_params=pltpu.CompilerParams(
            dimension_semantics=("parallel",),
            vmem_limit_bytes=vmem_limit,
        ),
        cost_estimate=pl.CostEstimate(
            flops=2 * bp, transcendentals=0, bytes_accessed=2 * bp * 4),
    )(x2d, w_s, b_s)

    return out2d.reshape(bp, 1)[:B]


def _linear_forward_general(x, weight, b_s, B, D):
    # TODO(synk): for extremely large D (>~512K f32) also tile D with an f32
    # accumulator scratch and a trailing "arbitrary" reduction axis; a single
    # 8-row block already exceeds v7x's scoped VMEM there.
    # TODO(synk): for 2 <= D < 128 a lane-dense (1, tb) output (sublane->lane
    # transform before the store) would further cut the writeback stream.
    bytes_per_row = D * 4
    tb = max(_SUBLANES, _TARGET_X_BUF_BYTES // bytes_per_row)
    # Keep >= ~4 grid steps when possible so v7x can shard across its 2 TCs.
    tb = min(tb, max(_SUBLANES, _round_up(pl.cdiv(B, 4), _SUBLANES)))
    tb = max(_SUBLANES, _round_down(tb, _SUBLANES))

    grid = pl.cdiv(B, tb)

    needed = (2 * tb * D * 4                               # double-buffered x
              + 2 * _SUBLANES * _round_up(D, _LANES) * 4   # weight (padded)
              + 2 * tb * _LANES * 4                        # output (lane-padded)
              + (2 << 20))                                 # compiler slack
    vmem_limit = int(min(max(2 * needed, 32 << 20), 64 << 20))

    out = pl.pallas_call(
        _matvec_kernel,
        out_shape=jax.ShapeDtypeStruct((B, 1), jnp.float32),
        grid_spec=pltpu.PrefetchScalarGridSpec(
            num_scalar_prefetch=0,
            grid=(grid,),
            in_specs=[
                # Ragged last block: no host-side jnp.pad of x; Pallas masks
                # the tail-row output stores of the final tile.
                pl.BlockSpec((tb, D), lambda i: (i, 0)),                 # x tile
                pl.BlockSpec((1, D), lambda i: (0, 0)),                  # weight row
                pl.BlockSpec(memory_space=pltpu.MemorySpace.SMEM),       # bias
            ],
            out_specs=pl.BlockSpec((tb, 1), lambda i: (i, 0)),
        ),
        compiler_params=pltpu.CompilerParams(
            dimension_semantics=("parallel",),
            vmem_limit_bytes=vmem_limit,
        ),
        cost_estimate=pl.CostEstimate(
            flops=2 * B * D, transcendentals=0,
            bytes_accessed=(B * D + D + B + 1) * 4),
    )(x, weight, b_s)

    return out


def linear_forward(x, weight, bias):
    """Forward of nn.Linear(input_size, 1).

    x:      (B, D) f32
    weight: (1, D) f32  -- PyTorch nn.Linear layout (out_features, in_features)
    bias:   (1,)   f32
    returns (B, 1) f32
    """
    B, D = x.shape
    assert weight.shape == (1, D)
    x = x.astype(jnp.float32)
    weight = weight.astype(jnp.float32)
    b_s = bias.reshape(1, 1).astype(jnp.float32)

    if D == 1:
        return _linear_forward_d1(x, weight, b_s, B)
    return _linear_forward_general(x, weight, b_s, B, D)


if __name__ == "__main__":
    key = jax.random.PRNGKey(0)
    k1, k2, k3, k4, k5, k6 = jax.random.split(key, 6)

    # Case 1: the module's actual config -- single-variable linear regression
    # (input_size = 1). Exercises the lane-dense elementwise path + slicing.
    input_size = 1
    batch = 1000
    bound = 1.0 / (input_size ** 0.5)
    w1 = jax.random.uniform(k1, (1, input_size), jnp.float32, -bound, bound)
    b1 = jax.random.uniform(k2, (1,), jnp.float32, -bound, bound)
    x1 = jax.random.normal(k3, (batch, input_size), jnp.float32)

    out1 = jax.block_until_ready(linear_forward(x1, w1, b1))
    ref1 = x1 @ w1.T + b1
    assert out1.shape == (batch, 1)
    assert jnp.allclose(out1, ref1, atol=1e-5, rtol=1e-5)

    # Case 2: multi-feature input with a ragged batch -- exercises the general
    # matvec path and the masked final tile (no host-side padding of x).
    input_size2 = 16
    batch2 = 300
    bound2 = 1.0 / (input_size2 ** 0.5)
    w2 = jax.random.uniform(k4, (1, input_size2), jnp.float32, -bound2, bound2)
    b2 = jax.random.uniform(k5, (1,), jnp.float32, -bound2, bound2)
    x2 = jax.random.normal(k6, (batch2, input_size2), jnp.float32)

    out2 = jax.block_until_ready(linear_forward(x2, w2, b2))
    ref2 = x2 @ w2.T + b2
    assert out2.shape == (batch2, 1)
    assert jnp.allclose(out2, ref2, atol=1e-5, rtol=1e-5)

    print("KERNEL_OK")
</pallas_src>

<mosaic_0001>
module attributes {stable_mosaic.version = 11 : i64} {
  func.func @_affine_kernel(%arg0: i32, %arg1: memref<8x128xf32, #tpu.memory_space<vmem>>, %arg2: memref<1x1xf32, #tpu.memory_space<smem>>, %arg3: memref<1x1xf32, #tpu.memory_space<smem>>, %arg4: memref<8x128xf32, #tpu.memory_space<vmem>>) attributes {dimension_semantics = [#tpu.dimension_semantics<parallel>], iteration_bounds = array<i64: 1>, scalar_prefetch = 0 : i64, scratch_operands = 0 : i64, tpu.core_type = #tpu.core_type<tc>, window_params = [{transform_indices = @transform_0, window_bounds = array<i64: 8, 128>}, {transform_indices = @transform_1, window_bounds = array<i64: 1, 1>}, {transform_indices = @transform_2, window_bounds = array<i64: 1, 1>}, {transform_indices = @transform_3, window_bounds = array<i64: 8, 128>}]} {
    %c0 = arith.constant 0 : index
    %c0_0 = arith.constant 0 : index
    %0 = vector.load %arg1[%c0, %c0_0] : memref<8x128xf32, #tpu.memory_space<vmem>>, vector<8x128xf32>
    %c0_1 = arith.constant 0 : index
    %c0_2 = arith.constant 0 : index
    %1 = memref.load %arg2[%c0_1, %c0_2] : memref<1x1xf32, #tpu.memory_space<smem>>
    %2 = vector.broadcast %1 : f32 to vector<8x128xf32>
    %3 = arith.mulf %0, %2 : vector<8x128xf32>
    %c0_3 = arith.constant 0 : index
    %c0_4 = arith.constant 0 : index
    %4 = memref.load %arg3[%c0_3, %c0_4] : memref<1x1xf32, #tpu.memory_space<smem>>
    %5 = vector.broadcast %4 : f32 to vector<8x128xf32>
    %6 = arith.addf %3, %5 : vector<8x128xf32>
    %c0_5 = arith.constant 0 : index
    %c0_6 = arith.constant 0 : index
    %7 = vector.load %arg4[%c0_5, %c0_6] : memref<8x128xf32, #tpu.memory_space<vmem>>, vector<8x128xf32>
    tpu.vector_store %arg4[%c0_5, %c0_6], %6 {strides = array<i32>} : memref<8x128xf32, #tpu.memory_space<vmem>>, vector<8x128xf32>,
    return
  }
  func.func @transform_0(%arg0: i32) -> (i32, i32) {
    %c0_i32 = arith.constant 0 : i32
    %c0_i32_0 = arith.constant 0 : i32
    return %arg0, %c0_i32 : i32, i32
  }
  func.func @transform_1(%arg0: i32) -> (i32, i32) {
    %c0_i32 = arith.constant 0 : i32
    %c0_i32_0 = arith.constant 0 : i32
    %c0_i32_1 = arith.constant 0 : i32
    return %c0_i32, %c0_i32_0 : i32, i32
  }
  func.func @transform_2(%arg0: i32) -> (i32, i32) {
    %c0_i32 = arith.constant 0 : i32
    %c0_i32_0 = arith.constant 0 : i32
    %c0_i32_1 = arith.constant 0 : i32
    return %c0_i32, %c0_i32_0 : i32, i32
  }
  func.func @transform_3(%arg0: i32) -> (i32, i32) {
    %c0_i32 = arith.constant 0 : i32
    %c0_i32_0 = arith.constant 0 : i32
    return %arg0, %c0_i32 : i32, i32
  }
}

</mosaic_0001>

<bundles_post_ra>
// kernel: tpu_custom_call.1
= control target key start
LH: loop header
LB: loop body
LE: loop exit
PB: predicated region body
PF: predicated region fallthrough
CT: control target
= control target key end

     0   :  { %10 = vsyncpa [#allocation5], 0  ;;  %s154_s0 = inlined_call_operand.hbm [shape: f32[8,128], index: 0, kind: input, shape index: {}]   ;;  %s155_s1 = inlined_call_operand.<no memory space> [shape: f32[1,1], index: 1, kind: input, shape index: {}]   ;;  %s156_s2 = inlined_call_operand.<no memory space> [shape: f32[1,1], index: 2, kind: input, shape index: {}]   ;;  %s157_s3 = inlined_call_operand.hbm [shape: f32[8,128], index: 3, kind: output, shape index: {}]  }
   0x1   :  { %11 = vsyncpa [#allocation6], 0  ;;  %s102_s12 = smov [#allocation4]   ;;  %s54_s16 = scalar_lea.hbm %s154_s0, 128 }
   0x2   :  { %s18_s13 = sshll.u32 %s102_s12, 4  ;;  %p55_p0 = scmp.ne.s32.totalorder %s154_s0, %s54_s16  ;;  %s19_s13 = int_to_ptr.vmem [resolvable:$true] %s18_s13 }
   0x3   :  { %p58_p1 = scmp.lt.u32.totalorder %s54_s16, %s154_s0 }
   0x5   :  { %p60_p2 = pnand %p58_p1, %p55_p0 }
   0x7   :  { %63 = shalt.err (!%p60_p2)
}
   0x8   :  { %s64_s21 = scalar_lea.vmem %s19_s13, 128  ;;  %p69_p4 = scmp.lt.s32.totalorder %s19_s13, %s19_s13 }
   0x9   :  { %p65_p3 = scmp.ne.s32.totalorder %s19_s13, %s64_s21  ;;  %p70_p5 = scmp.lt.s32.totalorder %s64_s21, %s64_s21 }
   0xb   :  { %p71_p6 = por %p70_p5, %p69_p4 }
   0xd   :  { %p72_p7 = pnand %p71_p6, %p65_p3 }
   0xf   :  { %75 = shalt.err (!%p72_p7)
}
  0x10   :  { %21 = dma.hbm_to_vmem [thread:$0]  %s154_s0, 128, %s19_s13, [#allocation5]  }
  0x11   :  { %98 = dma.done.wait [#allocation5], 128  }
  0x12   :  { %99 = vsyncadd [#allocation5], 4294967168  ;;  %v31_v0 = vstv %s155_s1  ;;  %v29_v1 = vld [vmem:[#allocation4] sm:$0xff]  ;;  %v34_v2 = vstv %s156_s2  ;;  %s103_s28 = smov [#allocation7]  }
  0x13   :  { %s43_s29 = sshll.u32 %s103_s28, 4  ;;  %v32_v3 = vmul.f32 %v31_v0, %v29_v1  ;;  %s44_s29 = int_to_ptr.vmem [resolvable:$true] %s43_s29 }
  0x14   :  { %s76_s30 = scalar_lea.vmem %s44_s29, 128  ;;  %p81_p9 = scmp.lt.s32.totalorder %s44_s29, %s44_s29 }
  0x15   :  { %v35_v4 = vadd.f32 %v34_v2, %v32_v3  ;;  %p77_p8 = scmp.ne.s32.totalorder %s44_s29, %s76_s30  ;;  %p82_p10 = scmp.lt.s32.totalorder %s76_s30, %s76_s30 }
  0x17   :  { %36 = vst [vmem:[#allocation7] sm:$0xff] %v35_v4  ;;  %p83_p11 = por %p82_p10, %p81_p9 }
  0x19   :  { %p84_p12 = pnand %p83_p11, %p77_p8 }
  0x1b   :  { %87 = shalt.err (!%p84_p12)
}
  0x1c   :  { %s88_s4 = scalar_lea.hbm %s157_s3, 128 }
  0x1d   :  { %p89_p13 = scmp.ne.s32.totalorder %s157_s3, %s88_s4  ;;  %p92_p0 = scmp.lt.u32.totalorder %s88_s4, %s157_s3 }
  0x1f   :  { %p94_p1 = pnand %p92_p0, %p89_p13 }
  0x21   :  { %97 = shalt.err (!%p94_p1)
}
  0x22   :  { %46 = dma.vmem_to_hbm [thread:$0]  %s44_s29, 128, %s157_s3, [#allocation6]  }
  0x23   :  { %100 = dma.done.wait [#allocation6], 128  }
  0x24   :  { %101 = vsyncadd [#allocation6], 4294967168 }
  0x25   :  { %50 = vsyncpa [#allocation5], 1 }
  0x26   :  { %51 = vsyncpa [#allocation6], 1 }

</bundles_post_ra>
